<compile_context>
chip_gen: v6e
topology: v6e:2x2x1
jax: 0.10.0
libtpu: 0.0.40
codegen_flags: <defaults>
</compile_context>

<pallas_src>
import functools

import jax
import jax.numpy as jnp
from jax.experimental import pallas as pl
from jax.experimental.pallas import tpu as pltpu


def _round_up(x, m):
    return (x + m - 1) // m * m


def elm_kernel(x_ref, w1_ref, b1_ref, w2_ref, b2_ref, o_ref, *, approx_sigmoid):
    # fc1: (tb, in_p) @ (in_p, hid_p) with f32 accumulation on the MXU.
    h = jnp.dot(x_ref[...], w1_ref[...], preferred_element_type=jnp.float32)
    h = h + b1_ref[...]
    # sigmoid: exp on the EUP; reciprocal exact (VPU) or approximate (EUP).
    e = 1.0 + jnp.exp(-h)
    if approx_sigmoid:
        h = pl.reciprocal(e, approx=True)
    else:
        h = 1.0 / e
    # fc2: (tb, hid_p) @ (hid_p, out_p) with f32 accumulation on the MXU.
    y = jnp.dot(h.astype(w2_ref.dtype), w2_ref[...],
                preferred_element_type=jnp.float32)
    y = y + b2_ref[...]
    o_ref[...] = y.astype(o_ref.dtype)


def elm_forward(x, w1, b1, w2, b2, *, tile_b=None, compute_dtype=None):
    """ELM forward pass.

    x:  (B, input_size)
    w1: (input_size, hidden)      (pre-transposed vs. PyTorch nn.Linear)
    b1: (hidden,) or (1, hidden)
    w2: (hidden, output)
    b2: (output,) or (1, output)
    compute_dtype: dtype fed to the MXU (e.g. jnp.bfloat16); accumulation and
                   elementwise math stay in f32. Defaults to x.dtype.
    """
    orig_dtype = x.dtype
    B, in_dim = x.shape
    hid = w1.shape[1]
    out_dim = w2.shape[1]

    b1 = jnp.asarray(b1, jnp.float32).reshape(1, hid)
    b2 = jnp.asarray(b2, jnp.float32).reshape(1, out_dim)

    if compute_dtype is None:
        compute_dtype = orig_dtype
    compute_dtype = jnp.dtype(compute_dtype)
    x = x.astype(compute_dtype)
    w1 = w1.astype(compute_dtype)
    w2 = w2.astype(compute_dtype)

    # Zero-pad feature dims to multiples of 128 (lane-dense stores, full MXU).
    in_p = _round_up(in_dim, 128)
    hid_p = _round_up(hid, 128)
    out_p = _round_up(out_dim, 128)

    # Batch tile: one grid step for small batches, otherwise large 8-aligned
    # tiles (>= 2 steps for big B keeps both v7x TensorCores busy).
    if tile_b is None:
        tile_b = min(_round_up(B, 8), 512)
    tile_b = max(8, _round_up(tile_b, 8))

    cdt_size = compute_dtype.itemsize

    def vmem_estimate(tb):
        # Everything is double-buffered by the automatic pipeline.
        return 2 * (tb * in_p * cdt_size          # x tile
                    + in_p * hid_p * cdt_size     # W1 (resident)
                    + hid_p * 4                   # b1
                    + hid_p * out_p * cdt_size    # W2 (resident)
                    + out_p * 4                   # b2
                    + tb * out_p * 4)             # output tile

    # Shrink the batch tile if needed to stay under a conservative VMEM budget
    # (v7x has only 64 MiB of VMEM per TensorCore).
    budget = 48 << 20
    while tile_b > 8 and vmem_estimate(tile_b) > budget:
        tile_b = max(8, _round_up(tile_b // 2, 8))
    # TODO(synk): for very large hidden sizes the resident W1/W2 alone exceed
    # VMEM; that regime needs a K-tiled grid axis with an f32 accumulator.

    B_p = _round_up(B, tile_b)
    grid = (B_p // tile_b,)

    xp = jnp.pad(x, ((0, B_p - B), (0, in_p - in_dim)))
    w1p = jnp.pad(w1, ((0, in_p - in_dim), (0, hid_p - hid)))
    b1p = jnp.pad(b1, ((0, 0), (0, hid_p - hid)))
    w2p = jnp.pad(w2, ((0, hid_p - hid), (0, out_p - out_dim)))
    b2p = jnp.pad(b2, ((0, 0), (0, out_p - out_dim)))

    cost = pl.CostEstimate(
        flops=2 * B_p * (in_p * hid_p + hid_p * out_p),
        transcendentals=B_p * hid_p,
        bytes_accessed=int(xp.size * cdt_size + w1p.size * cdt_size
                           + w2p.size * cdt_size + b1p.size * 4 + b2p.size * 4
                           + B_p * out_p * jnp.dtype(orig_dtype).itemsize),
    )

    vmem_limit = int(min(max(vmem_estimate(tile_b) + (4 << 20), 32 << 20),
                         64 << 20))

    kernel = functools.partial(
        elm_kernel, approx_sigmoid=(compute_dtype == jnp.dtype(jnp.bfloat16)))

    y_p = pl.pallas_call(
        kernel,
        out_shape=jax.ShapeDtypeStruct((B_p, out_p), orig_dtype),
        grid_spec=pltpu.PrefetchScalarGridSpec(
            num_scalar_prefetch=0,
            grid=grid,
            in_specs=[
                pl.BlockSpec((tile_b, in_p), lambda i: (i, 0)),    # x tile
                pl.BlockSpec((in_p, hid_p), lambda i: (0, 0)),     # W1 (resident)
                pl.BlockSpec((1, hid_p), lambda i: (0, 0)),        # b1
                pl.BlockSpec((hid_p, out_p), lambda i: (0, 0)),    # W2 (resident)
                pl.BlockSpec((1, out_p), lambda i: (0, 0)),        # b2
            ],
            out_specs=pl.BlockSpec((tile_b, out_p), lambda i: (i, 0)),
        ),
        compiler_params=pltpu.CompilerParams(
            dimension_semantics=("parallel",),
            vmem_limit_bytes=vmem_limit),
        cost_estimate=cost,
    )(xp, w1p, b1p, w2p, b2p)

    # Slice off batch / output-feature padding outside the kernel.
    return y_p[:B, :out_dim]


def init_linear_params(kw, kb, in_features, out_features, dtype=jnp.float32):
    """PyTorch nn.Linear default init: U(-1/sqrt(fan_in), 1/sqrt(fan_in))."""
    bound = 1.0 / (in_features ** 0.5)
    # Stored transposed relative to PyTorch: (in_features, out_features).
    w = jax.random.uniform(kw, (in_features, out_features), dtype,
                           minval=-bound, maxval=bound)
    b = jax.random.uniform(kb, (1, out_features), dtype,
                           minval=-bound, maxval=bound)
    return w, b


if __name__ == "__main__":
    # Small shapes consistent with the module:
    # batch=16, input=32, hidden=64, output=16.
    B, input_size, hidden_size, output_size = 16, 32, 64, 16

    key = jax.random.PRNGKey(0)
    kx, kw1, kb1, kw2, kb2 = jax.random.split(key, 5)

    x = jax.random.normal(kx, (B, input_size), dtype=jnp.float32)
    w1, b1 = init_linear_params(kw1, kb1, input_size, hidden_size)
    w2, b2 = init_linear_params(kw2, kb2, hidden_size, output_size)

    # Pure-JAX reference.
    ref = (1.0 / (1.0 + jnp.exp(-(x @ w1 + b1)))) @ w2 + b2

    # f32 path (exact sigmoid) -- tight correctness check.
    out_f32 = jax.block_until_ready(elm_forward(x, w1, b1, w2, b2))
    assert out_f32.shape == (B, output_size)
    assert jnp.allclose(out_f32, ref, atol=1e-5, rtol=1e-5), "f32 mismatch"

    # bf16 MXU-operand path (f32 accumulate, EUP approx sigmoid) -- loose check.
    out_bf16 = jax.block_until_ready(
        elm_forward(x, w1, b1, w2, b2, compute_dtype=jnp.bfloat16))
    assert out_bf16.shape == (B, output_size)
    assert jnp.allclose(out_bf16, ref, atol=5e-2, rtol=5e-2), "bf16 mismatch"

    print("KERNEL_OK")
</pallas_src>

<mosaic_0001>
module attributes {stable_mosaic.version = 11 : i64} {
  func.func @elm_kernel(%arg0: i32, %arg1: memref<16x128xf32, #tpu.memory_space<vmem>>, %arg2: memref<128x128xf32, #tpu.memory_space<vmem>>, %arg3: memref<1x128xf32, #tpu.memory_space<vmem>>, %arg4: memref<128x128xf32, #tpu.memory_space<vmem>>, %arg5: memref<1x128xf32, #tpu.memory_space<vmem>>, %arg6: memref<16x128xf32, #tpu.memory_space<vmem>>) attributes {dimension_semantics = [#tpu.dimension_semantics<parallel>], iteration_bounds = array<i64: 1>, scalar_prefetch = 0 : i64, scratch_operands = 0 : i64, tpu.core_type = #tpu.core_type<tc>, window_params = [{transform_indices = @transform_0, window_bounds = array<i64: 16, 128>}, {pipeline_mode = #tpu.pipeline_mode<synchronous>, transform_indices = @transform_1, window_bounds = array<i64: 128, 128>}, {pipeline_mode = #tpu.pipeline_mode<synchronous>, transform_indices = @transform_2, window_bounds = array<i64: 1, 128>}, {pipeline_mode = #tpu.pipeline_mode<synchronous>, transform_indices = @transform_3, window_bounds = array<i64: 128, 128>}, {pipeline_mode = #tpu.pipeline_mode<synchronous>, transform_indices = @transform_4, window_bounds = array<i64: 1, 128>}, {transform_indices = @transform_5, window_bounds = array<i64: 16, 128>}]} {
    %c0 = arith.constant 0 : index
    %c0_0 = arith.constant 0 : index
    %0 = vector.load %arg1[%c0, %c0_0] : memref<16x128xf32, #tpu.memory_space<vmem>>, vector<16x128xf32>
    %c0_1 = arith.constant 0 : index
    %c0_2 = arith.constant 0 : index
    %1 = vector.load %arg2[%c0_1, %c0_2] : memref<128x128xf32, #tpu.memory_space<vmem>>, vector<128x128xf32>
    %cst = arith.constant dense<0.000000e+00> : vector<16x128xf32>
    %2 = tpu.matmul %0, %1, %cst {dimension_numbers = #tpu.dot_dimension_numbers<[1], [0], [0], [1], [0, 0, 1, 1], [], []>} : vector<16x128xf32>, vector<128x128xf32>, vector<16x128xf32> -> vector<16x128xf32>
    %c0_3 = arith.constant 0 : index
    %c0_4 = arith.constant 0 : index
    %3 = vector.load %arg3[%c0_3, %c0_4] : memref<1x128xf32, #tpu.memory_space<vmem>>, vector<1x128xf32>
    %4 = vector.broadcast %3 : vector<1x128xf32> to vector<16x128xf32>
    %5 = arith.addf %2, %4 : vector<16x128xf32>
    %cst_5 = arith.constant 0.000000e+00 : f32
    %6 = vector.broadcast %cst_5 : f32 to vector<16x128xf32>
    %7 = arith.subf %6, %5 : vector<16x128xf32>
    %8 = math.exp %7 : vector<16x128xf32>
    %cst_6 = arith.constant 1.000000e+00 : f32
    %9 = vector.broadcast %cst_6 : f32 to vector<16x128xf32>
    %10 = arith.addf %9, %8 : vector<16x128xf32>
    %cst_7 = arith.constant 1.000000e+00 : f32
    %11 = vector.broadcast %cst_7 : f32 to vector<16x128xf32>
    %12 = arith.divf %11, %10 : vector<16x128xf32>
    %c0_8 = arith.constant 0 : index
    %c0_9 = arith.constant 0 : index
    %13 = vector.load %arg4[%c0_8, %c0_9] : memref<128x128xf32, #tpu.memory_space<vmem>>, vector<128x128xf32>
    %cst_10 = arith.constant dense<0.000000e+00> : vector<16x128xf32>
    %14 = tpu.matmul %12, %13, %cst_10 {dimension_numbers = #tpu.dot_dimension_numbers<[1], [0], [0], [1], [0, 0, 1, 1], [], []>} : vector<16x128xf32>, vector<128x128xf32>, vector<16x128xf32> -> vector<16x128xf32>
    %c0_11 = arith.constant 0 : index
    %c0_12 = arith.constant 0 : index
    %15 = vector.load %arg5[%c0_11, %c0_12] : memref<1x128xf32, #tpu.memory_space<vmem>>, vector<1x128xf32>
    %16 = vector.broadcast %15 : vector<1x128xf32> to vector<16x128xf32>
    %17 = arith.addf %14, %16 : vector<16x128xf32>
    %c0_13 = arith.constant 0 : index
    %c0_14 = arith.constant 0 : index
    %18 = vector.load %arg6[%c0_13, %c0_14] : memref<16x128xf32, #tpu.memory_space<vmem>>, vector<16x128xf32>
    tpu.vector_store %arg6[%c0_13, %c0_14], %17 {strides = array<i32>} : memref<16x128xf32, #tpu.memory_space<vmem>>, vector<16x128xf32>,
    return
  }
  func.func @transform_0(%arg0: i32) -> (i32, i32) {
    %c0_i32 = arith.constant 0 : i32
    %c0_i32_0 = arith.constant 0 : i32
    return %arg0, %c0_i32 : i32, i32
  }
  func.func @transform_1(%arg0: i32) -> (i32, i32) {
    %c0_i32 = arith.constant 0 : i32
    %c0_i32_0 = arith.constant 0 : i32
    %c0_i32_1 = arith.constant 0 : i32
    return %c0_i32, %c0_i32_0 : i32, i32
  }
  func.func @transform_2(%arg0: i32) -> (i32, i32) {
    %c0_i32 = arith.constant 0 : i32
    %c0_i32_0 = arith.constant 0 : i32
    %c0_i32_1 = arith.constant 0 : i32
    return %c0_i32, %c0_i32_0 : i32, i32
  }
  func.func @transform_3(%arg0: i32) -> (i32, i32) {
    %c0_i32 = arith.constant 0 : i32
    %c0_i32_0 = arith.constant 0 : i32
    %c0_i32_1 = arith.constant 0 : i32
    return %c0_i32, %c0_i32_0 : i32, i32
  }
  func.func @transform_4(%arg0: i32) -> (i32, i32) {
    %c0_i32 = arith.constant 0 : i32
    %c0_i32_0 = arith.constant 0 : i32
    %c0_i32_1 = arith.constant 0 : i32
    return %c0_i32, %c0_i32_0 : i32, i32
  }
  func.func @transform_5(%arg0: i32) -> (i32, i32) {
    %c0_i32 = arith.constant 0 : i32
    %c0_i32_0 = arith.constant 0 : i32
    return %arg0, %c0_i32 : i32, i32
  }
}

</mosaic_0001>

<bundles_post_ra>
// kernel: tpu_custom_call.1
= control target key start
LH: loop header
LB: loop body
LE: loop exit
PB: predicated region body
PF: predicated region fallthrough
CT: control target
= control target key end

     0   :  { %10 = vsyncpa [#allocation3], 0  ;;  %s566_s0 = inlined_call_operand.hbm [shape: f32[16,128], index: 0, kind: input, shape index: {}]   ;;  %s567_s1 = inlined_call_operand.hbm [shape: f32[128,128], index: 1, kind: input, shape index: {}]   ;;  %s568_s2 = inlined_call_operand.vmem [shape: f32[1,128], index: 2, kind: input, shape index: {}]   ;;  %s569_s3 = inlined_call_operand.hbm [shape: f32[128,128], index: 3, kind: input, shape index: {}]   ;;  %s570_s4 = inlined_call_operand.vmem [shape: f32[1,128], index: 4, kind: input, shape index: {}]   ;;  %s571_s5 = inlined_call_operand.hbm [shape: f32[16,128], index: 5, kind: output, shape index: {}]  }
   0x1   :  { %11 = vsyncpa [#allocation6], 0 }
   0x2   :  { %12 = vsyncpa [#allocation4], 0  ;;  %s500_s18 = smov [#allocation5]   ;;  %s501_s20 = smov [#allocation2]  }
   0x3   :  { %s30_s19 = sshll.u32 %s500_s18, 4  ;;  %s18_s21 = sshll.u32 %s501_s20, 4  ;;  %s31_s19 = int_to_ptr.vmem [resolvable:$true] %s30_s19  ;;  %s19_s21 = int_to_ptr.vmem [resolvable:$true] %s18_s21 }
   0x4   :  { %s422_s22 = scalar_lea.vmem %s31_s19, 2048  ;;  %p427_p1 = scmp.lt.s32.totalorder %s31_s19, %s31_s19 }
   0x5   :  { %p423_p0 = scmp.ne.s32.totalorder %s31_s19, %s422_s22  ;;  %p428_p2 = scmp.lt.s32.totalorder %s422_s22, %s422_s22 }
   0x7   :  { %p429_p3 = por %p428_p2, %p427_p1 }
   0x9   :  { %p430_p4 = pnand %p429_p3, %p423_p0 }
   0xb   :  { %433 = shalt.err (!%p430_p4)
}
   0xc   :  { %s502_s23 = smov 128   ;;  %s503_s24 = smov 8  }
   0xd   :  { %36 = dma.hbm_to_vmem [thread:$0]  %s567_s1, 2048, %s31_s19, [#allocation6], %s502_s23, %s502_s23, %s503_s24  }
   0xe   :  { %s442_s27 = scalar_lea.vmem %s19_s21, 256  ;;  %p447_p6 = scmp.lt.s32.totalorder %s19_s21, %s19_s21 }
   0xf   :  { %p443_p5 = scmp.ne.s32.totalorder %s19_s21, %s442_s27  ;;  %p448_p7 = scmp.lt.s32.totalorder %s442_s27, %s442_s27 }
  0x11   :  { %p449_p8 = por %p448_p7, %p447_p6 }
  0x13   :  { %p450_p9 = pnand %p449_p8, %p443_p5 }
  0x15   :  { %453 = shalt.err (!%p450_p9)
}
  0x16   :  { %24 = dma.hbm_to_vmem [thread:$0]  %s566_s0, 256, %s19_s21, [#allocation3], %s502_s23, %s502_s23, %s503_s24  }
  0x17   :  { %s504_s30 = smov [#allocation7]  }
  0x18   :  { %s44_s6 = sshll.u32 %s504_s30, 4  ;;  %s45_s6 = int_to_ptr.vmem [resolvable:$true] %s44_s6 }
  0x19   :  { %s462_s7 = scalar_lea.vmem %s45_s6, 2048  ;;  %p467_p11 = scmp.lt.s32.totalorder %s45_s6, %s45_s6 }
  0x1a   :  { %p463_p10 = scmp.ne.s32.totalorder %s45_s6, %s462_s7  ;;  %p468_p12 = scmp.lt.s32.totalorder %s462_s7, %s462_s7 }
  0x1c   :  { %p469_p13 = por %p468_p12, %p467_p11 }
  0x1e   :  { %p470_p0 = pnand %p469_p13, %p463_p10 }
  0x20   :  { %473 = shalt.err (!%p470_p0)
}
  0x21   :  { %50 = dma.hbm_to_vmem [thread:$0]  %s569_s3, 2048, %s45_s6, [#allocation6], %s502_s23, %s502_s23, %s503_s24  }
  0x22   :  { %494 = dma.done.wait [#allocation3], 256  }
  0x23   :  { %495 = vsyncadd [#allocation3], 4294967040 }
  0x24   :  { %496 = dma.done.wait [#allocation6], 4096  }
  0x25   :  { %497 = vsyncadd [#allocation6], 4294963200  ;;  %v79_v0 = vld [vmem:[#allocation5 + $0x78] sm:$0xff]  ;;  %v78_v1 = vld [vmem:[#allocation5 + $0x70] sm:$0xff]  ;;  %s505_s10 = smov [#allocation8]  }
  0x26   :  { %330 = vmatprep.subr.mxu0 %v79_v0  ;;  %v77_v2 = vld [vmem:[#allocation5 + $0x68] sm:$0xff]  ;;  %v76_v3 = vld [vmem:[#allocation5 + $0x60] sm:$0xff]  ;;  %v62_v4 = vld [vmem:[#allocation2] sm:$0xff]  ;;  %s279_s11 = sshll.u32 %s505_s10, 4  ;;  %s280_s11 = int_to_ptr.vmem [resolvable:$true] %s279_s11 }
  0x27   :  { %331 = vmatpush3.msra.mxu0 %v79_v0  ;;  %v75_v5 = vld [vmem:[#allocation5 + $0x58] sm:$0xff]  ;;  %362 = vmatprep.mubr.f32.mxu0 %v62_v4  ;;  %v74_v6 = vld [vmem:[#allocation5 + $0x50] sm:$0xff]  ;;  %v73_v7 = vld [vmem:[#allocation5 + $0x48] sm:$0xff]  ;;  %s474_s12 = scalar_lea.vmem %s280_s11, 256  ;;  %p479_p2 = scmp.lt.s32.totalorder %s280_s11, %s280_s11 }
  0x28   :  { %332 = vmatprep.subr.mxu0 %v78_v1  ;;  %v72_v8 = vld [vmem:[#allocation5 + $0x40] sm:$0xff]  ;;  %v71_v9 = vld [vmem:[#allocation5 + $0x38] sm:$0xff]  ;;  %v70_v10 = vld [vmem:[#allocation5 + $0x30] sm:$0xff]  ;;  %p475_p1 = scmp.ne.s32.totalorder %s280_s11, %s474_s12  ;;  %p480_p3 = scmp.lt.s32.totalorder %s474_s12, %s474_s12 }
  0x29   :  { %333 = vmatpush3.msra.mxu0 %v78_v1  ;;  %v69_v11 = vld [vmem:[#allocation5 + $0x28] sm:$0xff]  ;;  %v68_v12 = vld [vmem:[#allocation5 + $0x20] sm:$0xff]  ;;  %v67_v13 = vld [vmem:[#allocation5 + $0x18] sm:$0xff] }
  0x2a   :  { %334 = vmatprep.subr.mxu0 %v77_v2  ;;  %v66_v14 = vld [vmem:[#allocation5 + $0x10] sm:$0xff]  ;;  %v65_v15 = vld [vmem:[#allocation5 + $0x8] sm:$0xff]  ;;  %v64_v16 = vld [vmem:[#allocation5] sm:$0xff]  ;;  %p481_p4 = por %p480_p3, %p479_p2 }
  0x2b   :  { %335 = vmatpush3.msra.mxu0 %v77_v2  ;;  %v63_v17 = vld [vmem:[#allocation2 + $0x8] sm:$0xff]  ;;  %v188_v19 = vld [vmem:[#allocation7 + $0x70] sm:$0xff]  ;;  %v187_v20 = vld [vmem:[#allocation7 + $0x68] sm:$0xff] }
  0x2c   :  { %336 = vmatprep.subr.mxu0 %v76_v3  ;;  %v189_v18 = vld [vmem:[#allocation7 + $0x78] sm:$0xff]  ;;  %v186_v21 = vld [vmem:[#allocation7 + $0x60] sm:$0xff]  ;;  %v184_v23 = vld [vmem:[#allocation7 + $0x50] sm:$0xff]  ;;  %p482_p5 = pnand %p481_p4, %p475_p1 }
  0x2d   :  { %337 = vmatpush3.msra.mxu0 %v76_v3  ;;  %365 = vmatprep.subr.mxu1 %v189_v18  ;;  %v185_v22 = vld [vmem:[#allocation7 + $0x58] sm:$0xff]  ;;  %v183_v24 = vld [vmem:[#allocation7 + $0x48] sm:$0xff]  ;;  %v182_v25 = vld [vmem:[#allocation7 + $0x40] sm:$0xff] }
  0x2e   :  { %338 = vmatprep.subr.mxu0 %v75_v5  ;;  %366 = vmatpush3.msra.mxu1 %v189_v18  ;;  %v181_v26 = vld [vmem:[#allocation7 + $0x38] sm:$0xff]  ;;  %v180_v27 = vld [vmem:[#allocation7 + $0x30] sm:$0xff]  ;;  %v179_v28 = vld [vmem:[#allocation7 + $0x28] sm:$0xff] }
  0x2f   :  { %339 = vmatpush3.msra.mxu0 %v75_v5  ;;  %367 = vmatprep.subr.mxu1 %v188_v19  ;;  %v178_v29 = vld [vmem:[#allocation7 + $0x20] sm:$0xff]  ;;  %v177_v30 = vld [vmem:[#allocation7 + $0x18] sm:$0xff]  ;;  %v176_v31 = vld [vmem:[#allocation7 + $0x10] sm:$0xff] }
  0x30   :  { %340 = vmatprep.subr.mxu0 %v74_v6  ;;  %368 = vmatpush3.msra.mxu1 %v188_v19  ;;  %v175_v32 = vld [vmem:[#allocation7 + $0x8] sm:$0xff]  ;;  %v174_v33 = vld [vmem:[#allocation7] sm:$0xff]  ;;  %v292_v34 = vld [vmem:[%s568_s2] ss:$0 sm:$0xff] }
  0x31   :  { %341 = vmatpush3.msra.mxu0 %v74_v6  ;;  %369 = vmatprep.subr.mxu1 %v187_v20  ;;  %v293_v49 = vld [vmem:[%s570_s4] ss:$0 sm:$0xff] }
  0x32   :  { %342 = vmatprep.subr.mxu0 %v73_v7  ;;  %370 = vmatpush3.msra.mxu1 %v187_v20 }
  0x33   :  { %343 = vmatpush3.msra.mxu0 %v73_v7  ;;  %371 = vmatprep.subr.mxu1 %v186_v21 }
  0x34   :  { %344 = vmatprep.subr.mxu0 %v72_v8  ;;  %372 = vmatpush3.msra.mxu1 %v186_v21 }
  0x35   :  { %345 = vmatpush3.msra.mxu0 %v72_v8  ;;  %373 = vmatprep.subr.mxu1 %v185_v22 }
  0x36   :  { %346 = vmatprep.subr.mxu0 %v71_v9  ;;  %374 = vmatpush3.msra.mxu1 %v185_v22 }
  0x37   :  { %347 = vmatpush3.msra.mxu0 %v71_v9  ;;  %375 = vmatprep.subr.mxu1 %v184_v23 }
  0x38   :  { %348 = vmatprep.subr.mxu0 %v70_v10  ;;  %376 = vmatpush3.msra.mxu1 %v184_v23 }
  0x39   :  { %349 = vmatpush3.msra.mxu0 %v70_v10  ;;  %377 = vmatprep.subr.mxu1 %v183_v24 }
  0x3a   :  { %350 = vmatprep.subr.mxu0 %v69_v11  ;;  %378 = vmatpush3.msra.mxu1 %v183_v24 }
  0x3b   :  { %351 = vmatpush3.msra.mxu0 %v69_v11  ;;  %379 = vmatprep.subr.mxu1 %v182_v25 }
  0x3c   :  { %352 = vmatprep.subr.mxu0 %v68_v12  ;;  %380 = vmatpush3.msra.mxu1 %v182_v25 }
  0x3d   :  { %353 = vmatpush3.msra.mxu0 %v68_v12  ;;  %381 = vmatprep.subr.mxu1 %v181_v26 }
  0x3e   :  { %354 = vmatprep.subr.mxu0 %v67_v13  ;;  %382 = vmatpush3.msra.mxu1 %v181_v26 }
  0x3f   :  { %355 = vmatpush3.msra.mxu0 %v67_v13  ;;  %383 = vmatprep.subr.mxu1 %v180_v27 }
  0x40   :  { %356 = vmatprep.subr.mxu0 %v66_v14  ;;  %384 = vmatpush3.msra.mxu1 %v180_v27 }
  0x41   :  { %357 = vmatpush3.msra.mxu0 %v66_v14  ;;  %385 = vmatprep.subr.mxu1 %v179_v28 }
  0x42   :  { %358 = vmatprep.subr.mxu0 %v65_v15  ;;  %386 = vmatpush3.msra.mxu1 %v179_v28 }
  0x43   :  { %359 = vmatpush3.msra.mxu0 %v65_v15  ;;  %387 = vmatprep.subr.mxu1 %v178_v29 }
  0x44   :  { %360 = vmatprep.subr.mxu0 %v64_v16  ;;  %388 = vmatpush3.msra.mxu1 %v178_v29 }
  0x45   :  { %361 = vmatpush3.msra.mxu0 %v64_v16  ;;  %389 = vmatprep.subr.mxu1 %v177_v30 }
  0x46   :  { %363 = vmatmul.mubr.f32.vlgmr.msra.gmra.mxu0 %v63_v17  ;;  %390 = vmatpush3.msra.mxu1 %v177_v30 }
  0x47   :  { %391 = vmatprep.subr.mxu1 %v176_v31 }
  0x48   :  { %392 = vmatpush3.msra.mxu1 %v176_v31 }
  0x49   :  { %393 = vmatprep.subr.mxu1 %v175_v32 }
  0x4a   :  { %394 = vmatpush3.msra.mxu1 %v175_v32 }
  0x4b   :  { %395 = vmatprep.subr.mxu1 %v174_v33 }
  0x4c   :  { %396 = vmatpush3.msra.mxu1 %v174_v33 }
 0x106   :  { %v364_v35 = vpop.f32.mrf.mxu0 }
 0x107   :  { %v159_v36 = vadd.f32 %v364_v35, %v292_v34 }
 0x108   :  { %v153_v37 = vpop.f32.mrf.mxu0 }
 0x109   :  { %v163_v38 = vsub.f32 0.0, %v159_v36  ;;  %v154_v39 = vadd.f32 %v292_v34, %v153_v37 }
 0x10b   :  { %v166_v40 = vmul.f32 1.442695, %v163_v38  ;;  %v162_v41 = vsub.f32 0.0, %v154_v39 }
 0x10d   :  { %406 = vpow2.f32 %v166_v40  ;;  %v164_v42 = vmul.f32 1.442695, %v162_v41 }
 0x10f   :  { %408 = vpow2.f32 %v164_v42 }
 0x11a   :  { %v407_v43 = vpop.eup %406 }
 0x11b   :  { %v169_v45 = vadd.f32 1.0, %v407_v43 }
 0x11c   :  { %v409_v44 = vpop.eup %408 }
 0x11d   :  { %v168_v46 = vadd.f32 1.0, %v409_v44 }
 0x11f   :  { %410 = vrcp.f32 %v168_v46 }
 0x120   :  { %412 = vrcp.f32 %v169_v45 }
 0x12c   :  { %v411_v47 = vpop.eup %410 }
 0x12d   :  { %v413_v48 = vpop.eup %412  ;;  %397 = vmatprep.mubr.f32.mxu1 %v411_v47 }
 0x12e   :  { %398 = vmatmul.mubr.f32.vlgmr.msra.gmra.mxu1 %v413_v48 }
 0x1ee   :  { %v399_v50 = vpop.f32.mrf.mxu1 }
 0x1ef   :  { %v269_v51 = vadd.f32 %v399_v50, %v293_v49 }
 0x1f0   :  { %v263_v52 = vpop.f32.mrf.mxu1 }
 0x1f1   :  { %273 = vst [vmem:[#allocation8 + $0x8] sm:$0xff] %v269_v51  ;;  %v264_v53 = vadd.f32 %v293_v49, %v263_v52 }
 0x1f3   :  { %272 = vst [vmem:[#allocation8] sm:$0xff] %v264_v53 }
 0x1f4   :  { %485 = shalt.err (!%p482_p5)
}
 0x1f5   :  { %285 = dma.vmem_to_hbm [thread:$0]  %s280_s11, 256, %s571_s5, [#allocation4], %s502_s23, %s502_s23, %s503_s24  }
 0x1f6   :  { %498 = dma.done.wait [#allocation4], 256  }
 0x1f7   :  { %499 = vsyncadd [#allocation4], 4294967040 }
 0x1f8   :  { %289 = vsyncpa [#allocation3], 1 }
 0x1f9   :  { %290 = vsyncpa [#allocation6], 1 }
 0x1fa   :  { %291 = vsyncpa [#allocation4], 1 }

</bundles_post_ra>
